<compile_context>
chip_gen: v5e
topology: v5e:2x2
jax: 0.10.0
libtpu: 0.0.40
codegen_flags: <defaults>
</compile_context>

<pallas_src>
import jax
import jax.numpy as jnp
import numpy as np
from jax.experimental import pallas as pl
from jax.experimental.pallas import tpu as pltpu


# ----------------------------- Pallas kernels ------------------------------ #

def _pv_kernel(lr_ref, x_ref, g_ref, o_ref):
    """PV = inputs - lr * grad on a lane-dense (rows, n1*n2) slab.

    lr lives in SMEM (f32) via scalar prefetch; arithmetic in f32, cast on store.
    """
    x = x_ref[...].astype(jnp.float32)
    g = g_ref[...].astype(jnp.float32)
    o_ref[...] = (x - lr_ref[0] * g).astype(o_ref.dtype)


def _polar_matmul_kernel(u_ref, vh_ref, o_ref):
    """new_point[b] = U[b] @ Vh[b] for a tile of batch elements (MXU).

    jnp.dot is not batched; a batched einsum keeps the whole batch tile inside one
    grid step (lowers to a batched dot_general with f32 accumulation).
    """
    o_ref[...] = jnp.einsum(
        "bij,bjk->bik", u_ref[...], vh_ref[...],
        preferred_element_type=jnp.float32,
    ).astype(o_ref.dtype)


# ------------------------------- Wrappers ---------------------------------- #

def _largest_divisor_tile(n, max_tile):
    """Largest divisor of n that is <= max_tile (>= 1)."""
    bt = max(1, min(n, max_tile))
    while n % bt:
        bt -= 1
    return bt


def _pv_step(inputs, grad, lr):
    """Lane-dense elementwise tangent step PV = inputs - lr * grad."""
    n, n1, n2 = inputs.shape
    d = n1 * n2
    # Lane-dense layout: last dim = n1*n2 (512 lanes at the demo shape) so stores are
    # unmasked full-vreg writes instead of 16-lane masked vst.msk.
    x2 = inputs.reshape(n, d)
    g2 = grad.reshape(n, d)
    lr_arr = jnp.asarray([lr], dtype=jnp.float32)   # keep lr in f32 (SMEM scalar)

    # Batch tile: whole batch in one grid step when small (the common retraction
    # case); otherwise tile the batch axis in multiples of 8 sublanes so blocks stay
    # well under VMEM while satisfying the (8, 128) block rule.
    bytes_per_row = d * jnp.dtype(inputs.dtype).itemsize
    max_rows = max(8, int((4 << 20) // max(bytes_per_row, 1)))   # ~4 MiB input block
    if n <= max_rows or n % 8 != 0:
        bt = n
    else:
        bt = (min(n, max_rows) // 8) * 8
        while n % bt:      # n is a multiple of 8 here, so this terminates at bt >= 8
            bt -= 8
    grid = (n // bt,)

    spec = lambda: pl.BlockSpec((bt, d), lambda i, lr_s: (i, 0))
    pv2 = pl.pallas_call(
        _pv_kernel,
        out_shape=jax.ShapeDtypeStruct((n, d), inputs.dtype),
        grid_spec=pltpu.PrefetchScalarGridSpec(
            num_scalar_prefetch=1,
            grid=grid,
            in_specs=[spec(), spec()],
            out_specs=spec(),
        ),
        # Batch tiles are independent -> parallel (megacore sharding when grid >= 2).
        compiler_params=pltpu.CompilerParams(dimension_semantics=("parallel",)),
    )(lr_arr, x2, g2)
    return pv2.reshape(n, n1, n2)


def _polar_matmul(u, vh, out_dtype):
    """Batched U @ Vh with several batch elements per grid step."""
    n, n1, k = u.shape
    _, _, n2 = vh.shape
    # Tile the batch axis (whole batch when n is small) so grid overhead and DMAs are
    # amortized over a tile of small matmuls instead of one 32x16x16 matmul per step.
    bt = _largest_divisor_tile(n, 16)
    return pl.pallas_call(
        _polar_matmul_kernel,
        out_shape=jax.ShapeDtypeStruct((n, n1, n2), out_dtype),
        grid_spec=pltpu.PrefetchScalarGridSpec(
            num_scalar_prefetch=0,
            grid=(n // bt,),
            in_specs=[
                pl.BlockSpec((bt, n1, k), lambda b: (b, 0, 0)),
                pl.BlockSpec((bt, k, n2), lambda b: (b, 0, 0)),
            ],
            out_specs=pl.BlockSpec((bt, n1, n2), lambda b: (b, 0, 0)),
        ),
        # Batch-tile axis is independent -> parallel (v7x can shard across its 2 TCs
        # whenever n/bt >= 2).
        compiler_params=pltpu.CompilerParams(dimension_semantics=("parallel",)),
    )(u, vh)


def retraction_forward(inputs, grad, lr):
    """Grassmann retraction: orthogonal polar factor of (inputs - lr * grad)."""
    # Elementwise tangent step (Pallas, lane-dense).
    pv = _pv_step(inputs, grad, lr)

    # TODO(synk): batched SVD has no clean Pallas equivalent; done in plain JAX (f32).
    U, _S, Vh = jnp.linalg.svd(pv.astype(jnp.float32), full_matrices=False)
    # U: (n, n1, n_min), Vh: (n, n_min, n2). U @ Vh is the polar factor; the original
    # module's U[:, :, :n_min] slice is already a no-op for the thin SVD.

    # Batched matmul U @ V^T (Pallas, MXU), several batch elements per grid step.
    return _polar_matmul(U.astype(inputs.dtype), Vh.astype(inputs.dtype), inputs.dtype)


# --------------------------------- Demo ------------------------------------ #

if __name__ == "__main__":
    key = jax.random.PRNGKey(0)
    k_x, k_g = jax.random.split(key)

    batch, n1, n2 = 2, 32, 16   # inputs: (n, n1, n2) batch of tall matrices
    lr = 0.1

    inputs = jax.random.normal(k_x, (batch, n1, n2), dtype=jnp.float32)
    grad = jax.random.normal(k_g, (batch, n1, n2), dtype=jnp.float32)

    out = retraction_forward(inputs, grad, lr)
    out = jax.block_until_ready(out)

    # Pure-JAX reference for sanity.
    pv_ref = inputs - lr * grad
    U_ref, _, Vh_ref = jnp.linalg.svd(pv_ref, full_matrices=False)
    ref = jnp.einsum("bij,bjk->bik", U_ref, Vh_ref)

    assert out.shape == (batch, n1, n2)
    np.testing.assert_allclose(np.asarray(out), np.asarray(ref), atol=1e-4, rtol=1e-4)
    # Result columns should be orthonormal (Grassmann point): out^T out ~ I.
    gram = jnp.einsum("bij,bik->bjk", out, out)
    np.testing.assert_allclose(
        np.asarray(gram), np.broadcast_to(np.eye(n2), (batch, n2, n2)), atol=1e-3
    )

    print("KERNEL_OK")
</pallas_src>

<mosaic_0001>
module attributes {stable_mosaic.version = 11 : i64} {
  func.func @_pv_kernel(%arg0: i32, %arg1: memref<1xf32, #tpu.memory_space<smem>>, %arg2: memref<2x512xf32, #tpu.memory_space<vmem>>, %arg3: memref<2x512xf32, #tpu.memory_space<vmem>>, %arg4: memref<2x512xf32, #tpu.memory_space<vmem>>) attributes {dimension_semantics = [#tpu.dimension_semantics<parallel>], iteration_bounds = array<i64: 1>, scalar_prefetch = 1 : i64, scratch_operands = 0 : i64, tpu.core_type = #tpu.core_type<tc>, window_params = [{transform_indices = @transform_0, window_bounds = array<i64: 2, 512>}, {transform_indices = @transform_1, window_bounds = array<i64: 2, 512>}, {transform_indices = @transform_2, window_bounds = array<i64: 2, 512>}]} {
    %c0 = arith.constant 0 : index
    %c0_0 = arith.constant 0 : index
    %0 = vector.load %arg2[%c0, %c0_0] : memref<2x512xf32, #tpu.memory_space<vmem>>, vector<2x512xf32>
    %c0_1 = arith.constant 0 : index
    %c0_2 = arith.constant 0 : index
    %1 = vector.load %arg3[%c0_1, %c0_2] : memref<2x512xf32, #tpu.memory_space<vmem>>, vector<2x512xf32>
    %c0_3 = arith.constant 0 : index
    %2 = memref.load %arg1[%c0_3] : memref<1xf32, #tpu.memory_space<smem>>
    %3 = vector.broadcast %2 : f32 to vector<2x512xf32>
    %4 = arith.mulf %3, %1 : vector<2x512xf32>
    %5 = arith.subf %0, %4 : vector<2x512xf32>
    %c0_4 = arith.constant 0 : index
    %c0_5 = arith.constant 0 : index
    %6 = vector.load %arg4[%c0_4, %c0_5] : memref<2x512xf32, #tpu.memory_space<vmem>>, vector<2x512xf32>
    tpu.vector_store %arg4[%c0_4, %c0_5], %5 {strides = array<i32>} : memref<2x512xf32, #tpu.memory_space<vmem>>, vector<2x512xf32>,
    return
  }
  func.func @transform_0(%arg0: i32, %arg1: memref<1xf32, #tpu.memory_space<smem>>) -> (i32, i32) {
    %c0_i32 = arith.constant 0 : i32
    %c0_i32_0 = arith.constant 0 : i32
    return %arg0, %c0_i32 : i32, i32
  }
  func.func @transform_1(%arg0: i32, %arg1: memref<1xf32, #tpu.memory_space<smem>>) -> (i32, i32) {
    %c0_i32 = arith.constant 0 : i32
    %c0_i32_0 = arith.constant 0 : i32
    return %arg0, %c0_i32 : i32, i32
  }
  func.func @transform_2(%arg0: i32, %arg1: memref<1xf32, #tpu.memory_space<smem>>) -> (i32, i32) {
    %c0_i32 = arith.constant 0 : i32
    %c0_i32_0 = arith.constant 0 : i32
    return %arg0, %c0_i32 : i32, i32
  }
}

</mosaic_0001>

<bundles_post_ra>
// kernel: tpu_custom_call.1
= control target key start
LH: loop header
LB: loop body
LE: loop exit
PB: predicated region body
PF: predicated region fallthrough
CT: control target
= control target key end

     0   :  { %9 = vsyncpa [#allocation5], 0  ;;  %s183_s0 = inlined_call_operand.<no memory space> [shape: f32[1], index: 0, kind: input, shape index: {}]   ;;  %s184_s1 = inlined_call_operand.hbm [shape: f32[2,512], index: 1, kind: input, shape index: {}]   ;;  %s185_s2 = inlined_call_operand.hbm [shape: f32[2,512], index: 2, kind: input, shape index: {}]   ;;  %s186_s3 = inlined_call_operand.hbm [shape: f32[2,512], index: 3, kind: output, shape index: {}]  }
   0x1   :  { %10 = vsyncpa [#allocation8], 0 }
   0x2   :  { %11 = vsyncpa [#allocation6], 0  ;;  %s17_s14 = sshll.u32 %s184_s1, 4  ;;  %s148_s15 = smov [#allocation4]   ;;  %s18_s14 = int_to_ptr.hbm [resolvable:$true] %s17_s14 }
   0x3   :  { %s19_s16 = sshll.u32 %s148_s15, 4  ;;  %s28_s19 = sshll.u32 %s185_s2, 4  ;;  %s20_s16 = int_to_ptr.vmem [resolvable:$true] %s19_s16  ;;  %s29_s19 = int_to_ptr.hbm [resolvable:$true] %s28_s19 }
   0x4   :  { %22 = dma.hbm_to_vmem [thread:$0]  %s18_s14, 128, %s20_s16, [#allocation5]  }
   0x5   :  { %s149_s20 = smov [#allocation7]  }
   0x6   :  { %s30_s21 = sshll.u32 %s149_s20, 4  ;;  %s31_s21 = int_to_ptr.vmem [resolvable:$true] %s30_s21 }
   0x7   :  { %33 = dma.hbm_to_vmem [thread:$0]  %s29_s19, 128, %s31_s21, [#allocation8]  }
   0x8   :  { %142 = dma.done.wait [#allocation5], 128  }
   0x9   :  { %143 = vsyncadd [#allocation5], 4294967168 }
   0xa   :  { %144 = dma.done.wait [#allocation8], 128  }
   0xb   :  { %145 = vsyncadd [#allocation8], 4294967168  ;;  %v45_v0 = vstv %s183_s0  ;;  %v42_v1 = vld [vmem:[#allocation4] sm:$0xff]  ;;  %v43_v2 = vld [vmem:[#allocation7] sm:$0xff]  ;;  %s150_s23 = smov [#allocation9]   ;;  %s56_s26 = sshll.u32 %s186_s3, 4  ;;  %s57_s26 = int_to_ptr.hbm [resolvable:$true] %s56_s26 }
   0xc   :  { %s54_s24 = sshll.u32 %s150_s23, 4  ;;  %v46_v3 = vmul.f32 %v45_v0, %v43_v2  ;;  %s55_s24 = int_to_ptr.vmem [resolvable:$true] %s54_s24 }
   0xe   :  { %v47_v4 = vsub.f32 %v42_v1, %v46_v3 }
  0x10   :  { %48 = vst [vmem:[#allocation9] sm:$0xff] %v47_v4 }
  0x11   :  { %59 = dma.vmem_to_hbm [thread:$0]  %s55_s24, 128, %s57_s26, [#allocation6]  }
  0x12   :  { %146 = dma.done.wait [#allocation6], 128  }
  0x13   :  { %147 = vsyncadd [#allocation6], 4294967168 }
  0x14   :  { %64 = vsyncpa [#allocation5], 1 }
  0x15   :  { %65 = vsyncpa [#allocation8], 1 }
  0x16   :  { %66 = vsyncpa [#allocation6], 1 }

</bundles_post_ra>
